<compile_context>
chip_gen: v7x
topology: tpu7x:2x2x1
jax: 0.10.0
libtpu: 0.0.40
codegen_flags: <defaults>
</compile_context>

<pallas_src>
from functools import partial

import jax
import jax.numpy as jnp
from jax import lax
from jax.experimental import pallas as pl
from jax.experimental.pallas import tpu as pltpu


def _round_up(n: int, m: int) -> int:
    return ((n + m - 1) // m) * m


def _vmem_limit_cap() -> int:
    """~75% of this chip's physical VMEM (v5e/v6e ~96 MiB, v7x ~48 MiB)."""
    try:
        cap = int(pltpu.get_tpu_info().vmem_capacity_bytes)
    except Exception:
        cap = 128 * 1024 * 1024
    return max(32 * 1024 * 1024, int(cap * 0.75))


def _mlp_kernel(x_ref, w1_ref, b1_ref, w2_ref, b2_ref, o_ref):
    # Layer 1: h = x @ W1^T + b1.  Contract dim 1 of x with dim 1 of W1 (W1 kept
    # in PyTorch (out, in) layout), so no transposed weight copy is ever made.
    # bf16 operands on the MXU, f32 accumulation, f32 bias add.
    h = lax.dot_general(
        x_ref[...], w1_ref[...],
        dimension_numbers=(((1,), (1,)), ((), ())),
        preferred_element_type=jnp.float32,
    ) + b1_ref[...]

    # Layer 2: y = h @ W2^T + b2.  h stays in vregs (no VMEM scratch round trip);
    # it is cast to the MXU compute dtype only as an operand of the second matmul.
    y = lax.dot_general(
        h.astype(w2_ref.dtype), w2_ref[...],
        dimension_numbers=(((1,), (1,)), ((), ())),
        preferred_element_type=jnp.float32,
    ) + b2_ref[...]

    o_ref[...] = y.astype(o_ref.dtype)


def prepare_params(w1, b1, w2, b2, compute_dtype=jnp.bfloat16):
    """One-time (module-init) padding + dtype cast of the constant parameters.

    w1: (hid, in_dim)   b1: (hid,)      -- PyTorch (out_features, in_features)
    w2: (out_dim, hid)  b2: (out_dim,)
    """
    H, Din = w1.shape
    O, H2 = w2.shape
    assert H2 == H and b1.shape == (H,) and b2.shape == (O,)

    Dp, Hp, Op = _round_up(Din, 128), _round_up(H, 128), _round_up(O, 128)

    # Zero-padded weight rows/cols and zero bias lanes keep padded output columns
    # inert; padded batch rows are sliced off after the call.
    w1p = jnp.zeros((Hp, Dp), compute_dtype).at[:H, :Din].set(w1.astype(compute_dtype))
    w2p = jnp.zeros((Op, Hp), compute_dtype).at[:O, :H].set(w2.astype(compute_dtype))
    b1p = jnp.zeros((1, Hp), jnp.float32).at[0, :H].set(b1.astype(jnp.float32))
    b2p = jnp.zeros((1, Op), jnp.float32).at[0, :O].set(b2.astype(jnp.float32))
    return dict(w1p=w1p, b1p=b1p, w2p=w2p, b2p=b2p, out_dim=O, in_dim=Din)


@partial(jax.jit, static_argnames=("out_dim", "block_b"))
def _forward_impl(x, w1p, b1p, w2p, b2p, *, out_dim, block_b):
    B, Din = x.shape
    Hp, Dp = w1p.shape
    Op = w2p.shape[0]
    out_dtype = x.dtype
    cdt = w1p.dtype

    # Batch tile: prefer >= 2 grid steps so the "parallel" axis can shard across
    # v7x's two TensorCores; harmless (single TC) on v5e/v6e.
    B8 = _round_up(B, 8)
    if B8 >= 16:
        tm = min(block_b, _round_up((B8 + 1) // 2, 8))
    else:
        tm = B8
    Bp = _round_up(B8, tm)
    grid = (Bp // tm,)

    # Per-call padding of x only (weights were padded once in prepare_params).
    xp = jnp.pad(x.astype(cdt), ((0, Bp - B), (0, Dp - Din)))

    # VMEM budget: resident weights/biases (pipeline double-buffers them),
    # double-buffered x/out tiles, plus headroom for Mosaic internal scratch.
    cd_itm = jnp.dtype(cdt).itemsize
    out_itm = jnp.dtype(out_dtype).itemsize
    resident_bytes = 2 * ((Hp * Dp + Op * Hp) * cd_itm + (Hp + Op) * 4)
    io_bytes = 2 * tm * (Dp * cd_itm + Op * out_itm)
    vmem_need = resident_bytes + io_bytes + (2 << 20)
    vmem_limit = int(min(_vmem_limit_cap(), max(vmem_need, 32 << 20)))

    out_p = pl.pallas_call(
        _mlp_kernel,
        out_shape=jax.ShapeDtypeStruct((Bp, Op), out_dtype),
        grid_spec=pltpu.PrefetchScalarGridSpec(
            num_scalar_prefetch=0,
            grid=grid,
            in_specs=[
                pl.BlockSpec((tm, Dp), lambda i: (i, 0)),   # x tile (pipelined)
                pl.BlockSpec((Hp, Dp), lambda i: (0, 0)),   # W1 resident across steps
                pl.BlockSpec((1, Hp), lambda i: (0, 0)),    # b1 resident (f32)
                pl.BlockSpec((Op, Hp), lambda i: (0, 0)),   # W2 resident
                pl.BlockSpec((1, Op), lambda i: (0, 0)),    # b2 resident (f32)
            ],
            out_specs=pl.BlockSpec((tm, Op), lambda i: (i, 0)),
        ),
        compiler_params=pltpu.CompilerParams(
            dimension_semantics=("parallel",),
            vmem_limit_bytes=vmem_limit,
        ),
    )(xp, w1p, b1p, w2p, b2p)

    # Slice off batch / feature padding.
    return out_p[:B, :out_dim]


def nn_network_forward(x, params, *, block_b=256):
    """Forward pass of NN_Network: y = linear2(linear1(x))."""
    return _forward_impl(
        x, params["w1p"], params["b1p"], params["w2p"], params["b2p"],
        out_dim=params["out_dim"], block_b=block_b,
    )


if __name__ == "__main__":
    D = 32  # in_dim == hid == out_dim (required by the module's parameter overrides)
    key = jax.random.PRNGKey(0)
    kx, kx2, kw1, kb1, kw2, kb2 = jax.random.split(key, 6)

    # --- Test 1: exact parameters from the module's __init__ overrides ------------
    # zero weights + ones biases -> output is all ones regardless of x (exact).
    B = 8
    x = jax.random.normal(kx, (B, D), dtype=jnp.float32)
    w1 = jnp.zeros((D, D), jnp.float32)
    b1 = jnp.ones((D,), jnp.float32)
    w2 = jnp.zeros((D, D), jnp.float32)
    b2 = jnp.ones((D,), jnp.float32)

    params = prepare_params(w1, b1, w2, b2)
    out = jax.block_until_ready(nn_network_forward(x, params))
    ref = (x @ w1.T + b1) @ w2.T + b2
    assert out.shape == (B, D) and out.dtype == x.dtype
    assert jnp.allclose(out, ref, atol=1e-5, rtol=1e-5)

    # --- Test 2: random parameters, larger batch (multi-step pipelined grid) ------
    B2 = 64
    x2 = jax.random.normal(kx2, (B2, D), dtype=jnp.float32)
    w1r = 0.1 * jax.random.normal(kw1, (D, D), dtype=jnp.float32)
    b1r = jax.random.normal(kb1, (D,), dtype=jnp.float32)
    w2r = 0.1 * jax.random.normal(kw2, (D, D), dtype=jnp.float32)
    b2r = jax.random.normal(kb2, (D,), dtype=jnp.float32)

    params_r = prepare_params(w1r, b1r, w2r, b2r)
    out_r = jax.block_until_ready(nn_network_forward(x2, params_r))
    assert out_r.shape == (B2, D)

    # Loose sanity check vs. the pure-f32 PyTorch-semantics reference.
    ref_f32 = (x2 @ w1r.T + b1r) @ w2r.T + b2r
    assert jnp.allclose(out_r, ref_f32, atol=1e-1, rtol=1e-1)

    # Tight check vs. a precision-matched reference (bf16-rounded operands,
    # f32 accumulation) that mimics the kernel's bf16 MXU path exactly.
    xb = x2.astype(jnp.bfloat16).astype(jnp.float32)
    w1b = w1r.astype(jnp.bfloat16).astype(jnp.float32)
    w2b = w2r.astype(jnp.bfloat16).astype(jnp.float32)
    hb = xb @ w1b.T + b1r
    ref_bf = hb.astype(jnp.bfloat16).astype(jnp.float32) @ w2b.T + b2r
    assert jnp.allclose(out_r, ref_bf, atol=1e-3, rtol=1e-3)

    print("KERNEL_OK")
</pallas_src>

<mosaic_0001>
module attributes {stable_mosaic.version = 11 : i64} {
  func.func @_mlp_kernel(%arg0: i32, %arg1: memref<8x128xbf16, #tpu.memory_space<vmem>>, %arg2: memref<128x128xbf16, #tpu.memory_space<vmem>>, %arg3: memref<1x128xf32, #tpu.memory_space<vmem>>, %arg4: memref<128x128xbf16, #tpu.memory_space<vmem>>, %arg5: memref<1x128xf32, #tpu.memory_space<vmem>>, %arg6: memref<8x128xf32, #tpu.memory_space<vmem>>) attributes {dimension_semantics = [#tpu.dimension_semantics<parallel>], iteration_bounds = array<i64: 1>, scalar_prefetch = 0 : i64, scratch_operands = 0 : i64, tpu.core_type = #tpu.core_type<tc>, window_params = [{transform_indices = @transform_0, window_bounds = array<i64: 8, 128>}, {pipeline_mode = #tpu.pipeline_mode<synchronous>, transform_indices = @transform_1, window_bounds = array<i64: 128, 128>}, {pipeline_mode = #tpu.pipeline_mode<synchronous>, transform_indices = @transform_2, window_bounds = array<i64: 1, 128>}, {pipeline_mode = #tpu.pipeline_mode<synchronous>, transform_indices = @transform_3, window_bounds = array<i64: 128, 128>}, {pipeline_mode = #tpu.pipeline_mode<synchronous>, transform_indices = @transform_4, window_bounds = array<i64: 1, 128>}, {transform_indices = @transform_5, window_bounds = array<i64: 8, 128>}]} {
    %c0 = arith.constant 0 : index
    %c0_0 = arith.constant 0 : index
    %0 = vector.load %arg1[%c0, %c0_0] : memref<8x128xbf16, #tpu.memory_space<vmem>>, vector<8x128xbf16>
    %c0_1 = arith.constant 0 : index
    %c0_2 = arith.constant 0 : index
    %1 = vector.load %arg2[%c0_1, %c0_2] : memref<128x128xbf16, #tpu.memory_space<vmem>>, vector<128x128xbf16>
    %cst = arith.constant dense<0.000000e+00> : vector<8x128xf32>
    %2 = tpu.matmul %0, %1, %cst {dimension_numbers = #tpu.dot_dimension_numbers<[1], [1], [0], [0], [0, 0, 1, 0], [], []>} : vector<8x128xbf16>, vector<128x128xbf16>, vector<8x128xf32> -> vector<8x128xf32>
    %c0_3 = arith.constant 0 : index
    %c0_4 = arith.constant 0 : index
    %3 = vector.load %arg3[%c0_3, %c0_4] : memref<1x128xf32, #tpu.memory_space<vmem>>, vector<1x128xf32>
    %4 = vector.broadcast %3 : vector<1x128xf32> to vector<8x128xf32>
    %5 = arith.addf %2, %4 : vector<8x128xf32>
    %6 = arith.truncf %5 : vector<8x128xf32> to vector<8x128xbf16>
    %c0_5 = arith.constant 0 : index
    %c0_6 = arith.constant 0 : index
    %7 = vector.load %arg4[%c0_5, %c0_6] : memref<128x128xbf16, #tpu.memory_space<vmem>>, vector<128x128xbf16>
    %cst_7 = arith.constant dense<0.000000e+00> : vector<8x128xf32>
    %8 = tpu.matmul %6, %7, %cst_7 {dimension_numbers = #tpu.dot_dimension_numbers<[1], [1], [0], [0], [0, 0, 1, 0], [], []>} : vector<8x128xbf16>, vector<128x128xbf16>, vector<8x128xf32> -> vector<8x128xf32>
    %c0_8 = arith.constant 0 : index
    %c0_9 = arith.constant 0 : index
    %9 = vector.load %arg5[%c0_8, %c0_9] : memref<1x128xf32, #tpu.memory_space<vmem>>, vector<1x128xf32>
    %10 = vector.broadcast %9 : vector<1x128xf32> to vector<8x128xf32>
    %11 = arith.addf %8, %10 : vector<8x128xf32>
    %c0_10 = arith.constant 0 : index
    %c0_11 = arith.constant 0 : index
    %12 = vector.load %arg6[%c0_10, %c0_11] : memref<8x128xf32, #tpu.memory_space<vmem>>, vector<8x128xf32>
    tpu.vector_store %arg6[%c0_10, %c0_11], %11 {strides = array<i32>} : memref<8x128xf32, #tpu.memory_space<vmem>>, vector<8x128xf32>,
    return
  }
  func.func @transform_0(%arg0: i32) -> (i32, i32) {
    %c0_i32 = arith.constant 0 : i32
    %c0_i32_0 = arith.constant 0 : i32
    return %arg0, %c0_i32 : i32, i32
  }
  func.func @transform_1(%arg0: i32) -> (i32, i32) {
    %c0_i32 = arith.constant 0 : i32
    %c0_i32_0 = arith.constant 0 : i32
    %c0_i32_1 = arith.constant 0 : i32
    return %c0_i32, %c0_i32_0 : i32, i32
  }
  func.func @transform_2(%arg0: i32) -> (i32, i32) {
    %c0_i32 = arith.constant 0 : i32
    %c0_i32_0 = arith.constant 0 : i32
    %c0_i32_1 = arith.constant 0 : i32
    return %c0_i32, %c0_i32_0 : i32, i32
  }
  func.func @transform_3(%arg0: i32) -> (i32, i32) {
    %c0_i32 = arith.constant 0 : i32
    %c0_i32_0 = arith.constant 0 : i32
    %c0_i32_1 = arith.constant 0 : i32
    return %c0_i32, %c0_i32_0 : i32, i32
  }
  func.func @transform_4(%arg0: i32) -> (i32, i32) {
    %c0_i32 = arith.constant 0 : i32
    %c0_i32_0 = arith.constant 0 : i32
    %c0_i32_1 = arith.constant 0 : i32
    return %c0_i32, %c0_i32_0 : i32, i32
  }
  func.func @transform_5(%arg0: i32) -> (i32, i32) {
    %c0_i32 = arith.constant 0 : i32
    %c0_i32_0 = arith.constant 0 : i32
    return %arg0, %c0_i32 : i32, i32
  }
}

</mosaic_0001>

<bundles_post_ra>
// kernel: _forward_impl.1
= control target key start
LH: loop header
LB: loop body
LE: loop exit
PB: predicated region body
PF: predicated region fallthrough
CT: control target
= control target key end

     0   :  { %10 = vsyncpa [#allocation3], 0  ;;  %s544_s0 = inlined_call_operand.vmem [shape: bf16[8,128], index: 0, kind: input, shape index: {}]   ;;  %s545_s1 = inlined_call_operand.hbm [shape: bf16[128,128], index: 1, kind: input, shape index: {}]   ;;  %s546_s2 = inlined_call_operand.vmem [shape: f32[1,128], index: 2, kind: input, shape index: {}]   ;;  %s547_s3 = inlined_call_operand.hbm [shape: bf16[128,128], index: 3, kind: input, shape index: {}]   ;;  %s548_s4 = inlined_call_operand.vmem [shape: f32[1,128], index: 4, kind: input, shape index: {}]   ;;  %s549_s5 = inlined_call_operand.hbm [shape: f32[8,128], index: 5, kind: output, shape index: {}]  }
   0x1   :  { %11 = vsyncpa [#allocation6], 0 }
   0x2   :  { %12 = vsyncpa [#allocation4], 0  ;;  %s462_s18 = smov [#allocation2]   ;;  %s390_s22 = scalar_lea.hbm %s545_s1, 1024 }
   0x3   :  { %s20_s19 = sshll.u32 %s462_s18, 4  ;;  %p391_p0 = scmp.ne.s32.totalorder %s545_s1, %s390_s22  ;;  %s21_s19 = int_to_ptr.vmem [resolvable:$true] %s20_s19 }
   0x4   :  { %p394_p1 = scmp.lt.u32.totalorder %s390_s22, %s545_s1 }
   0x6   :  { %p396_p2 = pnand %p394_p1, %p391_p0 }
   0x8   :  { %399 = shalt.err (!%p396_p2)
}
   0x9   :  { %s400_s27 = scalar_lea.vmem %s21_s19, 1024  ;;  %p405_p4 = scmp.lt.s32.totalorder %s21_s19, %s21_s19 }
   0xa   :  { %p401_p3 = scmp.ne.s32.totalorder %s21_s19, %s400_s27  ;;  %p406_p5 = scmp.lt.s32.totalorder %s400_s27, %s400_s27 }
   0xc   :  { %p407_p6 = por %p406_p5, %p405_p4 }
   0xe   :  { %p408_p7 = pnand %p407_p6, %p401_p3 }
  0x10   :  { %411 = shalt.err (!%p408_p7)
}
  0x11   :  { %s463_s28 = smov 64   ;;  %s464_s29 = smov 4  }
  0x12   :  { %26 = dma.hbm_to_vmem [thread:$0]  %s545_s1, 1024, %s21_s19, [#allocation3], %s463_s28, %s463_s28, %s464_s29  }
  0x13   :  { %s465_s7 = smov [#allocation5]   ;;  %s412_s11 = scalar_lea.hbm %s547_s3, 1024 }
  0x14   :  { %s34_s8 = sshll.u32 %s465_s7, 4  ;;  %p413_p8 = scmp.ne.s32.totalorder %s547_s3, %s412_s11  ;;  %s35_s8 = int_to_ptr.vmem [resolvable:$true] %s34_s8 }
  0x15   :  { %p416_p9 = scmp.lt.u32.totalorder %s412_s11, %s547_s3 }
  0x17   :  { %p418_p10 = pnand %p416_p9, %p413_p8 }
  0x19   :  { %421 = shalt.err (!%p418_p10)
}
  0x1a   :  { %s422_s16 = scalar_lea.vmem %s35_s8, 1024  ;;  %p427_p12 = scmp.lt.s32.totalorder %s35_s8, %s35_s8 }
  0x1b   :  { %p423_p11 = scmp.ne.s32.totalorder %s35_s8, %s422_s16  ;;  %p428_p13 = scmp.lt.s32.totalorder %s422_s16, %s422_s16 }
  0x1d   :  { %p429_p0 = por %p428_p13, %p427_p12 }
  0x1f   :  { %p430_p1 = pnand %p429_p0, %p423_p11 }
  0x21   :  { %433 = shalt.err (!%p430_p1)
}
  0x22   :  { %40 = dma.hbm_to_vmem [thread:$0]  %s547_s3, 1024, %s35_s8, [#allocation6], %s463_s28, %s463_s28, %s464_s29  }
  0x23   :  { %456 = dma.done.wait [#allocation3], 1024  }
  0x24   :  { %457 = vsyncadd [#allocation3], 4294966272 }
  0x25   :  { %458 = dma.done.wait [#allocation6], 1024  }
  0x26   :  { %459 = vsyncadd [#allocation6], 4294966272  ;;  %v466_v0 = vmov 0.0   ;;  %vm467_vm0 = vmmov 0   ;;  %v374_v1 = vld [vmem:[#allocation2] sm:$0xff]   ;;  %v375_v2 = vld [vmem:[#allocation2 + $0x8] sm:$0xff]  }
  0x27   :  { %327 = vmatprep.subr.bf16.mxu0 %v466_v0  ;;  %343 = vmatprep.mubr.msk.bf16.mxu0 %vm467_vm0, %v466_v0  ;;  %v382_v3 = vld [vmem:[#allocation5] sm:$0xff]   ;;  %v376_v4 = vld [vmem:[#allocation2 + $0x10] sm:$0xff]   ;;  %v383_v5 = vld [vmem:[#allocation5 + $0x8] sm:$0xff]   ;;  %s468_s23 = smov [#allocation7]  }
  0x28   :  { %347 = vmatprep.subr.bf16.mxu1 %v466_v0  ;;  %363 = vmatprep.mubr.msk.bf16.mxu1 %vm467_vm0, %v466_v0  ;;  %v377_v6 = vld [vmem:[#allocation2 + $0x18] sm:$0xff]   ;;  %v384_v7 = vld [vmem:[#allocation5 + $0x10] sm:$0xff]   ;;  %v378_v8 = vld [vmem:[#allocation2 + $0x20] sm:$0xff]  }
  0x29   :  { %328 = vmatpush3.bf16.xpose.msra.mxu0 %v374_v1  ;;  %348 = vmatpush3.bf16.xpose.msra.mxu1 %v382_v3  ;;  %v385_v9 = vld [vmem:[#allocation5 + $0x18] sm:$0xff]   ;;  %v379_v10 = vld [vmem:[#allocation2 + $0x28] sm:$0xff]   ;;  %v386_v11 = vld [vmem:[#allocation5 + $0x20] sm:$0xff]  }
  0x2a   :  { %329 = vmatprep.subr.bf16.mxu0 %v466_v0  ;;  %349 = vmatprep.subr.bf16.mxu1 %v466_v0  ;;  %v380_v12 = vld [vmem:[#allocation2 + $0x30] sm:$0xff]   ;;  %v387_v13 = vld [vmem:[#allocation5 + $0x28] sm:$0xff]   ;;  %v381_v14 = vld [vmem:[#allocation2 + $0x38] sm:$0xff]  }
  0x2b   :  { %v388_v15 = vld [vmem:[#allocation5 + $0x30] sm:$0xff]   ;;  %v389_v17 = vld [vmem:[#allocation5 + $0x38] sm:$0xff]  }
  0x2c   :  { %v50_v16 = vld [vmem:[%s544_s0] sm:$0xf]  ;;  %s281_s0 = sshll.u32 %s468_s23, 4  ;;  %s282_s0 = int_to_ptr.vmem [resolvable:$true] %s281_s0 }
  0x2d   :  { %v291_v18 = vld [vmem:[%s546_s2] ss:$0 sm:$0xff]  ;;  %s434_s2 = scalar_lea.vmem %s282_s0, 128  ;;  %p439_p3 = scmp.lt.s32.totalorder %s282_s0, %s282_s0 }
  0x2e   :  { %v300_v25 = vld [vmem:[%s548_s4] ss:$0 sm:$0xff]  ;;  %p435_p2 = scmp.ne.s32.totalorder %s282_s0, %s434_s2  ;;  %p440_p4 = scmp.lt.s32.totalorder %s434_s2, %s434_s2 }
  0x30   :  { %p441_p5 = por %p440_p4, %p439_p3 }
  0x31   :  { %330 = vmatpush3.bf16.xpose.msra.mxu0 %v375_v2  ;;  %350 = vmatpush3.bf16.xpose.msra.mxu1 %v383_v5 }
  0x32   :  { %331 = vmatprep.subr.bf16.mxu0 %v466_v0  ;;  %351 = vmatprep.subr.bf16.mxu1 %v466_v0  ;;  %p442_p6 = pnand %p441_p5, %p435_p2 }
  0x39   :  { %332 = vmatpush3.bf16.xpose.msra.mxu0 %v376_v4  ;;  %352 = vmatpush3.bf16.xpose.msra.mxu1 %v384_v7 }
  0x3a   :  { %333 = vmatprep.subr.bf16.mxu0 %v466_v0  ;;  %353 = vmatprep.subr.bf16.mxu1 %v466_v0 }
  0x41   :  { %334 = vmatpush3.bf16.xpose.msra.mxu0 %v377_v6  ;;  %354 = vmatpush3.bf16.xpose.msra.mxu1 %v385_v9 }
  0x42   :  { %335 = vmatprep.subr.bf16.mxu0 %v466_v0  ;;  %355 = vmatprep.subr.bf16.mxu1 %v466_v0 }
  0x49   :  { %336 = vmatpush3.bf16.xpose.msra.mxu0 %v378_v8  ;;  %356 = vmatpush3.bf16.xpose.msra.mxu1 %v386_v11 }
  0x4a   :  { %337 = vmatprep.subr.bf16.mxu0 %v466_v0  ;;  %357 = vmatprep.subr.bf16.mxu1 %v466_v0 }
  0x51   :  { %338 = vmatpush3.bf16.xpose.msra.mxu0 %v379_v10  ;;  %358 = vmatpush3.bf16.xpose.msra.mxu1 %v387_v13 }
  0x52   :  { %339 = vmatprep.subr.bf16.mxu0 %v466_v0  ;;  %359 = vmatprep.subr.bf16.mxu1 %v466_v0 }
  0x59   :  { %340 = vmatpush3.bf16.xpose.msra.mxu0 %v380_v12  ;;  %360 = vmatpush3.bf16.xpose.msra.mxu1 %v388_v15 }
  0x5a   :  { %341 = vmatprep.subr.bf16.mxu0 %v466_v0  ;;  %361 = vmatprep.subr.bf16.mxu1 %v466_v0 }
  0x61   :  { %342 = vmatpush3.bf16.xpose.msra.mxu0 %v381_v14  ;;  %362 = vmatpush3.bf16.xpose.msra.mxu1 %v389_v17 }
  0x68   :  { %344 = vmatmul.mubr.bf16.vlgmr.msra.gmra.mrb[0].mxu0 %v50_v16 }
 0x13b   :  { %v156_v19 = vpop.f32.mrb[0].mxu0 }
 0x13c   :  { %v157_v20 = vadd.f32 %v291_v18, %v156_v19  ;;  %v345_v21 = vpop.f32.mrb[1].mxu0 }
 0x13d   :  { %v159_v22 = vpop.f32.mrb[2].mxu0 }
 0x13e   :  { %v162_v23 = vpack.c.bf16 %v157_v20, %v157_v20  ;;  %v346_v24 = vpop.f32.mrb[3].mxu0 }
 0x140   :  { %364 = vmatmul.mubr.bf16.vlgmr.msra.gmra.mrb[0].mxu1 %v162_v23 }
 0x213   :  { %v268_v26 = vpop.f32.mrb[0].mxu1 }
 0x214   :  { %v269_v27 = vadd.f32 %v300_v25, %v268_v26  ;;  %v365_v28 = vpop.f32.mrb[1].mxu1 }
 0x215   :  { %v271_v29 = vpop.f32.mrb[2].mxu1 }
 0x216   :  { %274 = vst [vmem:[#allocation7] sm:$0xff] %v269_v27  ;;  %v366_v30 = vpop.f32.mrb[3].mxu1 }
 0x217   :  { %445 = shalt.err (!%p442_p6)
}
 0x218   :  { %s446_s4 = scalar_lea.hbm %s549_s5, 128 }
 0x219   :  { %p447_p7 = scmp.ne.s32.totalorder %s549_s5, %s446_s4  ;;  %p450_p8 = scmp.lt.u32.totalorder %s446_s4, %s549_s5 }
 0x21b   :  { %p452_p9 = pnand %p450_p8, %p447_p7 }
 0x21d   :  { %455 = shalt.err (!%p452_p9)
}
 0x21e   :  { %284 = dma.vmem_to_hbm [thread:$0]  %s282_s0, 128, %s549_s5, [#allocation4]  }
 0x21f   :  { %460 = dma.done.wait [#allocation4], 128  }
 0x220   :  { %461 = vsyncadd [#allocation4], 4294967168 }
 0x221   :  { %288 = vsyncpa [#allocation3], 1 }
 0x222   :  { %289 = vsyncpa [#allocation6], 1 }
 0x223   :  { %290 = vsyncpa [#allocation4], 1 }

</bundles_post_ra>
